<compile_context>
chip_gen: v5e
topology: v5e:2x2
jax: 0.10.0
libtpu: 0.0.40
codegen_flags: <defaults>
</compile_context>

<pallas_src>
import functools

import jax
import jax.numpy as jnp
from jax.experimental import pallas as pl
from jax.experimental.pallas import tpu as pltpu

EPS = 1e-6  # FusedRMSNorm eps
BF16 = jnp.bfloat16


def _rmsnorm(v, w):
    # f32 statistics (rsqrt / mean stay on the f32 path even with bf16 matmul operands).
    ms = jnp.mean(v * v, axis=-1, keepdims=True)
    return v * jax.lax.rsqrt(ms + EPS) * w


# --------------------- kernel 1: RMSNorm1 + fused QKV projection + head split ---------------------
def qkv_kernel(x_ref, ln1_ref, wqkv_ref, q_ref, k_ref, v_ref, *, q_scale, n_head, d_head):
    D = n_head * d_head
    x = x_ref[0].astype(jnp.float32)                                   # (tS, D)
    lx = _rmsnorm(x, ln1_ref[0].astype(jnp.float32)).astype(BF16)      # bf16 MXU operand
    # One wide-N MXU matmul instead of three.
    qkv = jnp.dot(lx, wqkv_ref[...], preferred_element_type=jnp.float32)   # (tS, 3D) f32
    # Per-head lane-slice stores: write Q/K/V directly as (B, H, S, Dh) so the wrapper never
    # runs a full-tensor head-split transpose (layout plumbing removed).  1/sqrt(Dh) folded
    # into q here (not into the S x S scores).
    for h in range(n_head):
        lo = h * d_head
        q_ref[0, h, :, :] = (qkv[:, lo:lo + d_head] * q_scale).astype(BF16)
        k_ref[0, h, :, :] = qkv[:, D + lo:D + lo + d_head].astype(BF16)
        v_ref[0, h, :, :] = qkv[:, 2 * D + lo:2 * D + lo + d_head].astype(BF16)


# --------------------------- kernel 2: flash-style causal attention ---------------------------
def attn_kernel(q_ref, k_ref, v_ref, o_ref, m_sc, l_sc, acc_sc, *, tq, tk, n_head, d_head):
    # tq == tk is assumed (asserted in the wrapper) for the diagonal-tile mask / skip logic.
    qi = pl.program_id(1)
    kv = pl.program_id(2)

    @pl.when(kv == 0)
    def _():  # init online-softmax state
        m_sc[...] = jnp.full(m_sc.shape, -jnp.inf, m_sc.dtype)
        l_sc[...] = jnp.zeros(l_sc.shape, l_sc.dtype)
        acc_sc[...] = jnp.zeros(acc_sc.shape, acc_sc.dtype)

    def _scores():
        # all heads batched in one einsum (no per-head unroll)
        return jnp.einsum("hqd,hkd->hqk", q_ref[0], k_ref[0],
                          preferred_element_type=jnp.float32)          # (H, tq, tk) f32

    def _accumulate(s):
        m_prev = m_sc[...]
        m_new = jnp.maximum(m_prev, jnp.max(s, axis=-1, keepdims=True))
        alpha = jnp.exp(m_prev - m_new)
        p = jnp.exp(s - m_new)
        l_sc[...] = alpha * l_sc[...] + jnp.sum(p, axis=-1, keepdims=True)
        acc_sc[...] = alpha * acc_sc[...] + jnp.einsum(
            "hqk,hkd->hqd", p.astype(BF16), v_ref[0], preferred_element_type=jnp.float32)
        m_sc[...] = m_new

    # Fully-masked tiles (kv > qi) run neither branch: compute is skipped AND (via the clamped
    # kv index_map in the wrapper) no new K/V DMA is issued for them.
    @pl.when(kv < qi)      # strictly below the diagonal: no causal mask needed
    def _():
        _accumulate(_scores())

    @pl.when(kv == qi)     # diagonal tile: apply the causal mask (same tile offset, tq == tk)
    def _():
        s = _scores()
        row = jax.lax.broadcasted_iota(jnp.int32, (tq, tk), 0)
        col = jax.lax.broadcasted_iota(jnp.int32, (tq, tk), 1)
        _accumulate(jnp.where((col <= row)[None], s, -jnp.inf))

    @pl.when(kv == pl.num_programs(2) - 1)
    def _():  # finalize: EUP reciprocal; merge heads via lane-slice stores into a (tq, D) block
        ctx = acc_sc[...] * pl.reciprocal(l_sc[...], approx=True)      # (H, tq, Dh) f32
        for h in range(n_head):
            o_ref[0, :, h * d_head:(h + 1) * d_head] = ctx[h].astype(o_ref.dtype)


# --------------- kernel 3: out-proj + residual + RMSNorm2 + chunked SwiGLU FFN ---------------
def ffn_kernel(x_ref, ctx_ref, wo_ref, ln2_ref, wg_ref, wu_ref, wd_ref,
               o_ref, x1_sc, hn_sc, acc_sc):
    c = pl.program_id(2)

    @pl.when(c == 0)
    def _():  # compute residual-1 and RMSNorm2 once per (batch, seq-tile)
        sa = jnp.dot(ctx_ref[0], wo_ref[...], preferred_element_type=jnp.float32)
        x1 = x_ref[0].astype(jnp.float32) + sa                          # residual 1
        x1_sc[...] = x1
        hn_sc[...] = _rmsnorm(x1, ln2_ref[0].astype(jnp.float32)).astype(BF16)
        acc_sc[...] = jnp.zeros(acc_sc.shape, acc_sc.dtype)

    hN = hn_sc[...]                                                     # (tS, D) bf16
    g = jnp.dot(hN, wg_ref[...], preferred_element_type=jnp.float32)    # (tS, ck) f32
    u = jnp.dot(hN, wu_ref[...], preferred_element_type=jnp.float32)
    act = (g * jax.nn.sigmoid(g) * u).astype(BF16)                      # SiLU(g) * u
    acc_sc[...] += jnp.dot(act, wd_ref[...], preferred_element_type=jnp.float32)

    @pl.when(c == pl.num_programs(2) - 1)
    def _():
        # Dropout(0.1) is identity in eval mode (deterministic forward).
        o_ref[0] = (x1_sc[...] + acc_sc[...]).astype(o_ref.dtype)       # residual 2


# ------------------------------------------ wrapper ------------------------------------------
def _const_spec(shape):
    """BlockSpec for a weight whose block index never changes across the grid."""
    zeros = (0,) * len(shape)
    idx_map = lambda *_: zeros
    try:  # single-buffer constant blocks: halves their VMEM residency
        return pl.BlockSpec(shape, idx_map, pipeline_mode=pl.Buffered(1))
    except (TypeError, AttributeError):
        return pl.BlockSpec(shape, idx_map)


def _pick_tile(total, target):
    """Largest multiple-of-128 tile <= target that divides total; whole extent if small."""
    if total <= target:
        return total
    t = (target // 128) * 128
    while t >= 128 and total % t:
        t -= 128
    return t if (t >= 128 and total % t == 0) else total


def _vmem_limit_bytes():
    # Explicit scoped-VMEM budget (default is only 16/32 MiB): ~3/4 of physical,
    # i.e. ~96 MiB on v5e/v6e and ~48 MiB on v7x.
    try:
        return int(pltpu.get_tpu_info().vmem_capacity_bytes * 3 // 4)
    except Exception:
        return 48 * 1024 * 1024


def transformer_block(x, params, n_head):
    B, S, D = x.shape
    H4 = params["wg"].shape[1]
    assert D % n_head == 0
    Dh = D // n_head
    q_scale = 1.0 / (Dh ** 0.5)

    # ---- tiling: whole extents at toy sizes, large tiles at production sizes ----
    tS = _pick_tile(S, 512)    # qkv / ffn sequence tile (weight-streaming -> maximize intensity)
    tA = _pick_tile(S, 256)    # attention q/kv tile (256 fills the 256-wide MXU on v6e/v7x)
    ck = _pick_tile(H4, 512)   # FFN hidden-dim chunk
    # TODO(synk): on v7x (64 MiB VMEM) drop ck to 256 or split the out-proj into its own kernel.
    nS, nA, nC = S // tS, S // tA, H4 // ck
    assert S % tS == 0 and S % tA == 0 and H4 % ck == 0
    # TODO(synk): demo shapes (D=32, Dh=8) are below the 128-lane tile, so stores are masked
    #             and the MXU is under-filled; production shapes should pad Dh/D/H4 to 128.

    vmem_limit = _vmem_limit_bytes()
    f32b, b16b = 4, 2

    # bf16 operands for every MXU matmul; accumulation stays f32 via preferred_element_type.
    wqkv = jnp.concatenate([params["wq"], params["wk"], params["wv"]], axis=1).astype(BF16)
    wo = params["wo"].astype(BF16)
    wg, wu, wd = (params[n].astype(BF16) for n in ("wg", "wu", "wd"))

    # ---------------- pass 1: RMSNorm1 + fused QKV projection + head split ----------------
    act_spec2 = pl.BlockSpec((1, tS, D), lambda b, s: (b, s, 0))
    head_out_spec = pl.BlockSpec((1, n_head, tS, Dh), lambda b, s: (b, 0, s, 0))
    qkv_shape = jax.ShapeDtypeStruct((B, n_head, S, Dh), BF16)
    # TODO(synk): at D>=4096 on v7x the resident (D,3D) bf16 weight (~96 MiB) must instead be
    #             streamed in column chunks via an extra grid axis; fine as a single block here.
    q, k, v = pl.pallas_call(
        functools.partial(qkv_kernel, q_scale=q_scale, n_head=n_head, d_head=Dh),
        out_shape=(qkv_shape, qkv_shape, qkv_shape),
        grid=(B, nS),
        in_specs=[
            act_spec2,                                             # x tile
            _const_spec((1, D)),                                   # ln1
            _const_spec((D, 3 * D)),                               # fused wq|wk|wv
        ],
        out_specs=(head_out_spec, head_out_spec, head_out_spec),
        compiler_params=pltpu.CompilerParams(
            dimension_semantics=("parallel", "parallel"),
            vmem_limit_bytes=vmem_limit),
        cost_estimate=pl.CostEstimate(
            flops=6 * B * S * D * D,
            transcendentals=B * S,
            bytes_accessed=B * S * D * f32b + 3 * D * D * b16b + D * f32b
                           + 3 * B * S * D * b16b),
    )(x, params["ln1"], wqkv)

    # ---------------- pass 2: flash-style causal attention ----------------
    q_spec = pl.BlockSpec((1, n_head, tA, Dh), lambda b, qi, kv: (b, 0, qi, 0))
    # Clamp the kv block index to the diagonal: fully-masked upper-triangle tiles keep the
    # previous block index, so the pipeline issues NO new K/V DMA for them (~halves K/V HBM
    # traffic); the corresponding compute is skipped inside the kernel.
    kv_spec = pl.BlockSpec((1, n_head, tA, Dh),
                           lambda b, qi, kv: (b, 0, jnp.minimum(kv, qi), 0))
    ctx = pl.pallas_call(
        functools.partial(attn_kernel, tq=tA, tk=tA, n_head=n_head, d_head=Dh),
        out_shape=jax.ShapeDtypeStruct((B, S, D), BF16),
        grid=(B, nA, nA),
        in_specs=[q_spec, kv_spec, kv_spec],
        out_specs=pl.BlockSpec((1, tA, D), lambda b, qi, kv: (b, qi, 0)),
        scratch_shapes=[
            pltpu.VMEM((n_head, tA, 1), jnp.float32),    # running max
            pltpu.VMEM((n_head, tA, 1), jnp.float32),    # running denom
            pltpu.VMEM((n_head, tA, Dh), jnp.float32),   # output accumulator
        ],
        compiler_params=pltpu.CompilerParams(
            dimension_semantics=("parallel", "parallel", "arbitrary"),
            vmem_limit_bytes=vmem_limit),
        cost_estimate=pl.CostEstimate(
            flops=2 * B * S * S * D,                     # causal: ~half of dense attention
            transcendentals=B * n_head * S * S // 2,
            bytes_accessed=(nA + 2) * B * S * D * b16b),
    )(q, k, v)
    # ctx is already (B, S, D): head merge happened in-kernel via lane-slice stores (no XLA
    # transpose between pass 2 and pass 3).

    # ------- pass 3: out-proj + residual + RMSNorm2 + chunked SwiGLU FFN -------
    act_spec3 = pl.BlockSpec((1, tS, D), lambda b, s, c: (b, s, 0))
    out = pl.pallas_call(
        ffn_kernel,
        out_shape=jax.ShapeDtypeStruct((B, S, D), x.dtype),
        grid=(B, nS, nC),
        in_specs=[
            act_spec3,                                         # x (residual)
            act_spec3,                                         # attention context
            _const_spec((D, D)),                               # wo
            _const_spec((1, D)),                               # ln2
            pl.BlockSpec((D, ck), lambda b, s, c: (0, c)),     # gate chunk
            pl.BlockSpec((D, ck), lambda b, s, c: (0, c)),     # up   chunk
            pl.BlockSpec((ck, D), lambda b, s, c: (c, 0)),     # down chunk
        ],
        out_specs=act_spec3,
        scratch_shapes=[
            pltpu.VMEM((tS, D), jnp.float32),   # x + attn  (residual carry)
            pltpu.VMEM((tS, D), BF16),          # RMSNorm2 output (matmul operand)
            pltpu.VMEM((tS, D), jnp.float32),   # FFN accumulator
        ],
        compiler_params=pltpu.CompilerParams(
            dimension_semantics=("parallel", "parallel", "arbitrary"),
            vmem_limit_bytes=vmem_limit),
        cost_estimate=pl.CostEstimate(
            flops=2 * B * S * D * (D + 3 * H4),
            transcendentals=B * S * (H4 + 1),
            bytes_accessed=2 * B * S * D * f32b + B * S * D * b16b
                           + (D * D + 3 * D * H4) * b16b + D * f32b),
    )(x, ctx, wo, params["ln2"], wg, wu, wd)
    return out


# ------------------------------------------ reference ----------------------------------------
def reference(x, p, n_head):
    """Pure-JAX f32 reference of the same math."""
    B, S, D = x.shape
    Dh = D // n_head
    lx = _rmsnorm(x, p["ln1"][0])
    q = lx @ p["wq"]
    k = lx @ p["wk"]
    v = lx @ p["wv"]
    q = q.reshape(B, S, n_head, Dh).transpose(0, 2, 1, 3)
    k = k.reshape(B, S, n_head, Dh).transpose(0, 2, 1, 3)
    v = v.reshape(B, S, n_head, Dh).transpose(0, 2, 1, 3)
    scores = jnp.einsum("bhqd,bhkd->bhqk", q, k) / (Dh ** 0.5)
    mask = jnp.tril(jnp.ones((S, S), bool))
    scores = jnp.where(mask, scores, -jnp.inf)
    pattn = jax.nn.softmax(scores, axis=-1)
    attn = jnp.einsum("bhqk,bhkd->bhqd", pattn, v).transpose(0, 2, 1, 3).reshape(B, S, D)
    x = x + attn @ p["wo"]
    h = _rmsnorm(x, p["ln2"][0])
    g = h @ p["wg"]
    u = h @ p["wu"]
    ff = (jax.nn.silu(g) * u) @ p["wd"]
    return x + ff


if __name__ == "__main__":
    B, S, D, n_head = 2, 8, 32, 4
    H4 = 4 * D

    key = jax.random.PRNGKey(0)
    keys = jax.random.split(key, 9)
    scale = 0.02
    params = {
        "ln1": jnp.ones((1, D), jnp.float32),
        "ln2": jnp.ones((1, D), jnp.float32),
        "wq": scale * jax.random.normal(keys[0], (D, D), jnp.float32),
        "wk": scale * jax.random.normal(keys[1], (D, D), jnp.float32),
        "wv": scale * jax.random.normal(keys[2], (D, D), jnp.float32),
        "wo": scale * jax.random.normal(keys[3], (D, D), jnp.float32),
        "wg": scale * jax.random.normal(keys[4], (D, H4), jnp.float32),
        "wu": scale * jax.random.normal(keys[5], (D, H4), jnp.float32),
        "wd": scale * jax.random.normal(keys[6], (H4, D), jnp.float32),
    }
    x = jax.random.normal(keys[7], (B, S, D), jnp.float32)

    out = transformer_block(x, params, n_head)
    out = jax.block_until_ready(out)

    ref = reference(x, params, n_head)
    assert out.shape == (B, S, D)
    max_err = float(jnp.max(jnp.abs(out - ref)))
    # bf16 MXU operands => looser tolerance than a pure-f32 kernel.
    assert jnp.allclose(out, ref, atol=2e-2, rtol=2e-2), f"mismatch vs reference ({max_err})"

    print("KERNEL_OK")
</pallas_src>

<mosaic_0001>
module attributes {stable_mosaic.version = 11 : i64} {
  func.func @qkv_kernel(%arg0: i32, %arg1: i32, %arg2: memref<1x8x32xf32, #tpu.memory_space<vmem>>, %arg3: memref<1x32xf32, #tpu.memory_space<vmem>>, %arg4: memref<32x96xbf16, #tpu.memory_space<vmem>>, %arg5: memref<1x4x8x8xbf16, #tpu.memory_space<vmem>>, %arg6: memref<1x4x8x8xbf16, #tpu.memory_space<vmem>>, %arg7: memref<1x4x8x8xbf16, #tpu.memory_space<vmem>>) attributes {dimension_semantics = [#tpu.dimension_semantics<parallel>, #tpu.dimension_semantics<parallel>], iteration_bounds = array<i64: 2, 1>, scalar_prefetch = 0 : i64, scratch_operands = 0 : i64, tpu.core_type = #tpu.core_type<tc>, window_params = [{transform_indices = @transform_0, window_bounds = array<i64: 1, 8, 32>}, {pipeline_mode = #tpu.pipeline_mode<synchronous>, transform_indices = @transform_1, window_bounds = array<i64: 1, 32>}, {pipeline_mode = #tpu.pipeline_mode<synchronous>, transform_indices = @transform_2, window_bounds = array<i64: 32, 96>}, {transform_indices = @transform_3, window_bounds = array<i64: 1, 4, 8, 8>}, {transform_indices = @transform_4, window_bounds = array<i64: 1, 4, 8, 8>}, {transform_indices = @transform_5, window_bounds = array<i64: 1, 4, 8, 8>}]} {
    %c0 = arith.constant 0 : index
    %c0_0 = arith.constant 0 : index
    %c0_1 = arith.constant 0 : index
    %0 = vector.load %arg2[%c0, %c0_0, %c0_1] : memref<1x8x32xf32, #tpu.memory_space<vmem>>, vector<1x8x32xf32>
    %1 = vector.shape_cast %0 : vector<1x8x32xf32> to vector<8x32xf32>
    %c0_2 = arith.constant 0 : index
    %c0_3 = arith.constant 0 : index
    %2 = vector.load %arg3[%c0_2, %c0_3] : memref<1x32xf32, #tpu.memory_space<vmem>>, vector<1x32xf32>
    %3 = vector.shape_cast %2 : vector<1x32xf32> to vector<32xf32>
    %4 = arith.mulf %1, %1 : vector<8x32xf32>
    %cst = arith.constant dense<0.000000e+00> : vector<8xf32>
    %5 = vector.multi_reduction <add>, %4, %cst [1] : vector<8x32xf32> to vector<8xf32>
    %6 = vector.shape_cast %5 : vector<8xf32> to vector<8x1xf32>
    %cst_4 = arith.constant 3.200000e+01 : f32
    %7 = vector.broadcast %cst_4 : f32 to vector<8x1xf32>
    %8 = arith.divf %6, %7 : vector<8x1xf32>
    %cst_5 = arith.constant 9.99999997E-7 : f32
    %9 = vector.broadcast %cst_5 : f32 to vector<8x1xf32>
    %10 = arith.addf %8, %9 : vector<8x1xf32>
    %11 = math.rsqrt %10 : vector<8x1xf32>
    %12 = vector.broadcast %11 : vector<8x1xf32> to vector<8x32xf32>
    %13 = arith.mulf %1, %12 : vector<8x32xf32>
    %14 = vector.shape_cast %3 : vector<32xf32> to vector<1x32xf32>
    %15 = vector.broadcast %14 : vector<1x32xf32> to vector<8x32xf32>
    %16 = arith.mulf %13, %15 : vector<8x32xf32>
    %17 = arith.truncf %16 : vector<8x32xf32> to vector<8x32xbf16>
    %c0_6 = arith.constant 0 : index
    %c0_7 = arith.constant 0 : index
    %18 = vector.load %arg4[%c0_6, %c0_7] : memref<32x96xbf16, #tpu.memory_space<vmem>>, vector<32x96xbf16>
    %cst_8 = arith.constant dense<0.000000e+00> : vector<8x96xf32>
    %19 = tpu.matmul %17, %18, %cst_8 {dimension_numbers = #tpu.dot_dimension_numbers<[1], [0], [0], [1], [0, 0, 1, 1], [], []>} : vector<8x32xbf16>, vector<32x96xbf16>, vector<8x96xf32> -> vector<8x96xf32>
    %20 = vector.extract_strided_slice %19 {offsets = [0, 0], sizes = [8, 8], strides = [1, 1]} : vector<8x96xf32> to vector<8x8xf32>
    %cst_9 = arith.constant 0.353553385 : f32
    %21 = vector.broadcast %cst_9 : f32 to vector<8x8xf32>
    %22 = arith.mulf %20, %21 : vector<8x8xf32>
    %23 = arith.truncf %22 : vector<8x8xf32> to vector<8x8xbf16>
    %c0_10 = arith.constant 0 : index
    %c0_11 = arith.constant 0 : index
    %c0_12 = arith.constant 0 : index
    %c0_13 = arith.constant 0 : index
    %24 = vector.load %arg5[%c0_10, %c0_11, %c0_12, %c0_13] : memref<1x4x8x8xbf16, #tpu.memory_space<vmem>>, vector<1x1x8x8xbf16>
    %25 = vector.shape_cast %24 : vector<1x1x8x8xbf16> to vector<8x8xbf16>
    %26 = vector.shape_cast %23 : vector<8x8xbf16> to vector<1x1x8x8xbf16>
    tpu.vector_store %arg5[%c0_10, %c0_11, %c0_12, %c0_13], %26 {strides = array<i32>} : memref<1x4x8x8xbf16, #tpu.memory_space<vmem>>, vector<1x1x8x8xbf16>,
    %27 = vector.extract_strided_slice %19 {offsets = [0, 32], sizes = [8, 8], strides = [1, 1]} : vector<8x96xf32> to vector<8x8xf32>
    %28 = arith.truncf %27 : vector<8x8xf32> to vector<8x8xbf16>
    %c0_14 = arith.constant 0 : index
    %c0_15 = arith.constant 0 : index
    %c0_16 = arith.constant 0 : index
    %c0_17 = arith.constant 0 : index
    %29 = vector.load %arg6[%c0_14, %c0_15, %c0_16, %c0_17] : memref<1x4x8x8xbf16, #tpu.memory_space<vmem>>, vector<1x1x8x8xbf16>
    %30 = vector.shape_cast %29 : vector<1x1x8x8xbf16> to vector<8x8xbf16>
    %31 = vector.shape_cast %28 : vector<8x8xbf16> to vector<1x1x8x8xbf16>
    tpu.vector_store %arg6[%c0_14, %c0_15, %c0_16, %c0_17], %31 {strides = array<i32>} : memref<1x4x8x8xbf16, #tpu.memory_space<vmem>>, vector<1x1x8x8xbf16>,
    %32 = vector.extract_strided_slice %19 {offsets = [0, 64], sizes = [8, 8], strides = [1, 1]} : vector<8x96xf32> to vector<8x8xf32>
    %33 = arith.truncf %32 : vector<8x8xf32> to vector<8x8xbf16>
    %c0_18 = arith.constant 0 : index
    %c0_19 = arith.constant 0 : index
    %c0_20 = arith.constant 0 : index
    %c0_21 = arith.constant 0 : index
    %34 = vector.load %arg7[%c0_18, %c0_19, %c0_20, %c0_21] : memref<1x4x8x8xbf16, #tpu.memory_space<vmem>>, vector<1x1x8x8xbf16>
    %35 = vector.shape_cast %34 : vector<1x1x8x8xbf16> to vector<8x8xbf16>
    %36 = vector.shape_cast %33 : vector<8x8xbf16> to vector<1x1x8x8xbf16>
    tpu.vector_store %arg7[%c0_18, %c0_19, %c0_20, %c0_21], %36 {strides = array<i32>} : memref<1x4x8x8xbf16, #tpu.memory_space<vmem>>, vector<1x1x8x8xbf16>,
    %37 = vector.extract_strided_slice %19 {offsets = [0, 8], sizes = [8, 8], strides = [1, 1]} : vector<8x96xf32> to vector<8x8xf32>
    %cst_22 = arith.constant 0.353553385 : f32
    %38 = vector.broadcast %cst_22 : f32 to vector<8x8xf32>
    %39 = arith.mulf %37, %38 : vector<8x8xf32>
    %40 = arith.truncf %39 : vector<8x8xf32> to vector<8x8xbf16>
    %c0_23 = arith.constant 0 : index
    %c1 = arith.constant 1 : index
    %c0_24 = arith.constant 0 : index
    %c0_25 = arith.constant 0 : index
    %41 = vector.load %arg5[%c0_23, %c1, %c0_24, %c0_25] : memref<1x4x8x8xbf16, #tpu.memory_space<vmem>>, vector<1x1x8x8xbf16>
    %42 = vector.shape_cast %41 : vector<1x1x8x8xbf16> to vector<8x8xbf16>
    %43 = vector.shape_cast %40 : vector<8x8xbf16> to vector<1x1x8x8xbf16>
    tpu.vector_store %arg5[%c0_23, %c1, %c0_24, %c0_25], %43 {strides = array<i32>} : memref<1x4x8x8xbf16, #tpu.memory_space<vmem>>, vector<1x1x8x8xbf16>,
    %44 = vector.extract_strided_slice %19 {offsets = [0, 40], sizes = [8, 8], strides = [1, 1]} : vector<8x96xf32> to vector<8x8xf32>
    %45 = arith.truncf %44 : vector<8x8xf32> to vector<8x8xbf16>
    %c0_26 = arith.constant 0 : index
    %c1_27 = arith.constant 1 : index
    %c0_28 = arith.constant 0 : index
    %c0_29 = arith.constant 0 : index
    %46 = vector.load %arg6[%c0_26, %c1_27, %c0_28, %c0_29] : memref<1x4x8x8xbf16, #tpu.memory_space<vmem>>, vector<1x1x8x8xbf16>
    %47 = vector.shape_cast %46 : vector<1x1x8x8xbf16> to vector<8x8xbf16>
    %48 = vector.shape_cast %45 : vector<8x8xbf16> to vector<1x1x8x8xbf16>
    tpu.vector_store %arg6[%c0_26, %c1_27, %c0_28, %c0_29], %48 {strides = array<i32>} : memref<1x4x8x8xbf16, #tpu.memory_space<vmem>>, vector<1x1x8x8xbf16>,
    %49 = vector.extract_strided_slice %19 {offsets = [0, 72], sizes = [8, 8], strides = [1, 1]} : vector<8x96xf32> to vector<8x8xf32>
    %50 = arith.truncf %49 : vector<8x8xf32> to vector<8x8xbf16>
    %c0_30 = arith.constant 0 : index
    %c1_31 = arith.constant 1 : index
    %c0_32 = arith.constant 0 : index
    %c0_33 = arith.constant 0 : index
    %51 = vector.load %arg7[%c0_30, %c1_31, %c0_32, %c0_33] : memref<1x4x8x8xbf16, #tpu.memory_space<vmem>>, vector<1x1x8x8xbf16>
    %52 = vector.shape_cast %51 : vector<1x1x8x8xbf16> to vector<8x8xbf16>
    %53 = vector.shape_cast %50 : vector<8x8xbf16> to vector<1x1x8x8xbf16>
    tpu.vector_store %arg7[%c0_30, %c1_31, %c0_32, %c0_33], %53 {strides = array<i32>} : memref<1x4x8x8xbf16, #tpu.memory_space<vmem>>, vector<1x1x8x8xbf16>,
    %54 = vector.extract_strided_slice %19 {offsets = [0, 16], sizes = [8, 8], strides = [1, 1]} : vector<8x96xf32> to vector<8x8xf32>
    %cst_34 = arith.constant 0.353553385 : f32
    %55 = vector.broadcast %cst_34 : f32 to vector<8x8xf32>
    %56 = arith.mulf %54, %55 : vector<8x8xf32>
    %57 = arith.truncf %56 : vector<8x8xf32> to vector<8x8xbf16>
    %c0_35 = arith.constant 0 : index
    %c2 = arith.constant 2 : index
    %c0_36 = arith.constant 0 : index
    %c0_37 = arith.constant 0 : index
    %58 = vector.load %arg5[%c0_35, %c2, %c0_36, %c0_37] : memref<1x4x8x8xbf16, #tpu.memory_space<vmem>>, vector<1x1x8x8xbf16>
    %59 = vector.shape_cast %58 : vector<1x1x8x8xbf16> to vector<8x8xbf16>
    %60 = vector.shape_cast %57 : vector<8x8xbf16> to vector<1x1x8x8xbf16>
    tpu.vector_store %arg5[%c0_35, %c2, %c0_36, %c0_37], %60 {strides = array<i32>} : memref<1x4x8x8xbf16, #tpu.memory_space<vmem>>, vector<1x1x8x8xbf16>,
    %61 = vector.extract_strided_slice %19 {offsets = [0, 48], sizes = [8, 8], strides = [1, 1]} : vector<8x96xf32> to vector<8x8xf32>
    %62 = arith.truncf %61 : vector<8x8xf32> to vector<8x8xbf16>
    %c0_38 = arith.constant 0 : index
    %c2_39 = arith.constant 2 : index
    %c0_40 = arith.constant 0 : index
    %c0_41 = arith.constant 0 : index
    %63 = vector.load %arg6[%c0_38, %c2_39, %c0_40, %c0_41] : memref<1x4x8x8xbf16, #tpu.memory_space<vmem>>, vector<1x1x8x8xbf16>
    %64 = vector.shape_cast %63 : vector<1x1x8x8xbf16> to vector<8x8xbf16>
    %65 = vector.shape_cast %62 : vector<8x8xbf16> to vector<1x1x8x8xbf16>
    tpu.vector_store %arg6[%c0_38, %c2_39, %c0_40, %c0_41], %65 {strides = array<i32>} : memref<1x4x8x8xbf16, #tpu.memory_space<vmem>>, vector<1x1x8x8xbf16>,
    %66 = vector.extract_strided_slice %19 {offsets = [0, 80], sizes = [8, 8], strides = [1, 1]} : vector<8x96xf32> to vector<8x8xf32>
    %67 = arith.truncf %66 : vector<8x8xf32> to vector<8x8xbf16>
    %c0_42 = arith.constant 0 : index
    %c2_43 = arith.constant 2 : index
    %c0_44 = arith.constant 0 : index
    %c0_45 = arith.constant 0 : index
    %68 = vector.load %arg7[%c0_42, %c2_43, %c0_44, %c0_45] : memref<1x4x8x8xbf16, #tpu.memory_space<vmem>>, vector<1x1x8x8xbf16>
    %69 = vector.shape_cast %68 : vector<1x1x8x8xbf16> to vector<8x8xbf16>
    %70 = vector.shape_cast %67 : vector<8x8xbf16> to vector<1x1x8x8xbf16>
    tpu.vector_store %arg7[%c0_42, %c2_43, %c0_44, %c0_45], %70 {strides = array<i32>} : memref<1x4x8x8xbf16, #tpu.memory_space<vmem>>, vector<1x1x8x8xbf16>,
    %71 = vector.extract_strided_slice %19 {offsets = [0, 24], sizes = [8, 8], strides = [1, 1]} : vector<8x96xf32> to vector<8x8xf32>
    %cst_46 = arith.constant 0.353553385 : f32
    %72 = vector.broadcast %cst_46 : f32 to vector<8x8xf32>
    %73 = arith.mulf %71, %72 : vector<8x8xf32>
    %74 = arith.truncf %73 : vector<8x8xf32> to vector<8x8xbf16>
    %c0_47 = arith.constant 0 : index
    %c3 = arith.constant 3 : index
    %c0_48 = arith.constant 0 : index
    %c0_49 = arith.constant 0 : index
    %75 = vector.load %arg5[%c0_47, %c3, %c0_48, %c0_49] : memref<1x4x8x8xbf16, #tpu.memory_space<vmem>>, vector<1x1x8x8xbf16>
    %76 = vector.shape_cast %75 : vector<1x1x8x8xbf16> to vector<8x8xbf16>
    %77 = vector.shape_cast %74 : vector<8x8xbf16> to vector<1x1x8x8xbf16>
    tpu.vector_store %arg5[%c0_47, %c3, %c0_48, %c0_49], %77 {strides = array<i32>} : memref<1x4x8x8xbf16, #tpu.memory_space<vmem>>, vector<1x1x8x8xbf16>,
    %78 = vector.extract_strided_slice %19 {offsets = [0, 56], sizes = [8, 8], strides = [1, 1]} : vector<8x96xf32> to vector<8x8xf32>
    %79 = arith.truncf %78 : vector<8x8xf32> to vector<8x8xbf16>
    %c0_50 = arith.constant 0 : index
    %c3_51 = arith.constant 3 : index
    %c0_52 = arith.constant 0 : index
    %c0_53 = arith.constant 0 : index
    %80 = vector.load %arg6[%c0_50, %c3_51, %c0_52, %c0_53] : memref<1x4x8x8xbf16, #tpu.memory_space<vmem>>, vector<1x1x8x8xbf16>
    %81 = vector.shape_cast %80 : vector<1x1x8x8xbf16> to vector<8x8xbf16>
    %82 = vector.shape_cast %79 : vector<8x8xbf16> to vector<1x1x8x8xbf16>
    tpu.vector_store %arg6[%c0_50, %c3_51, %c0_52, %c0_53], %82 {strides = array<i32>} : memref<1x4x8x8xbf16, #tpu.memory_space<vmem>>, vector<1x1x8x8xbf16>,
    %83 = vector.extract_strided_slice %19 {offsets = [0, 88], sizes = [8, 8], strides = [1, 1]} : vector<8x96xf32> to vector<8x8xf32>
    %84 = arith.truncf %83 : vector<8x8xf32> to vector<8x8xbf16>
    %c0_54 = arith.constant 0 : index
    %c3_55 = arith.constant 3 : index
    %c0_56 = arith.constant 0 : index
    %c0_57 = arith.constant 0 : index
    %85 = vector.load %arg7[%c0_54, %c3_55, %c0_56, %c0_57] : memref<1x4x8x8xbf16, #tpu.memory_space<vmem>>, vector<1x1x8x8xbf16>
    %86 = vector.shape_cast %85 : vector<1x1x8x8xbf16> to vector<8x8xbf16>
    %87 = vector.shape_cast %84 : vector<8x8xbf16> to vector<1x1x8x8xbf16>
    tpu.vector_store %arg7[%c0_54, %c3_55, %c0_56, %c0_57], %87 {strides = array<i32>} : memref<1x4x8x8xbf16, #tpu.memory_space<vmem>>, vector<1x1x8x8xbf16>,
    return
  }
  func.func @transform_0(%arg0: i32, %arg1: i32) -> (i32, i32, i32) {
    %c0_i32 = arith.constant 0 : i32
    %c0_i32_0 = arith.constant 0 : i32
    return %arg0, %arg1, %c0_i32 : i32, i32, i32
  }
  func.func @transform_1(%arg0: i32, %arg1: i32) -> (i32, i32) {
    %c0_i32 = arith.constant 0 : i32
    %c0_i32_0 = arith.constant 0 : i32
    %c0_i32_1 = arith.constant 0 : i32
    return %c0_i32, %c0_i32_0 : i32, i32
  }
  func.func @transform_2(%arg0: i32, %arg1: i32) -> (i32, i32) {
    %c0_i32 = arith.constant 0 : i32
    %c0_i32_0 = arith.constant 0 : i32
    %c0_i32_1 = arith.constant 0 : i32
    return %c0_i32, %c0_i32_0 : i32, i32
  }
  func.func @transform_3(%arg0: i32, %arg1: i32) -> (i32, i32, i32, i32) {
    %c0_i32 = arith.constant 0 : i32
    %c0_i32_0 = arith.constant 0 : i32
    %c0_i32_1 = arith.constant 0 : i32
    return %arg0, %c0_i32, %arg1, %c0_i32_0 : i32, i32, i32, i32
  }
  func.func @transform_4(%arg0: i32, %arg1: i32) -> (i32, i32, i32, i32) {
    %c0_i32 = arith.constant 0 : i32
    %c0_i32_0 = arith.constant 0 : i32
    %c0_i32_1 = arith.constant 0 : i32
    return %arg0, %c0_i32, %arg1, %c0_i32_0 : i32, i32, i32, i32
  }
  func.func @transform_5(%arg0: i32, %arg1: i32) -> (i32, i32, i32, i32) {
    %c0_i32 = arith.constant 0 : i32
    %c0_i32_0 = arith.constant 0 : i32
    %c0_i32_1 = arith.constant 0 : i32
    return %arg0, %c0_i32, %arg1, %c0_i32_0 : i32, i32, i32, i32
  }
}

</mosaic_0001>

<bundles_post_ra>
// kernel: tpu_custom_call.1
= control target key start
LH: loop header
LB: loop body
LE: loop exit
PB: predicated region body
PF: predicated region fallthrough
CT: control target
= control target key end

     0   :  { %s1343_s0 = inlined_call_operand.hbm [shape: f32[2,8,32], index: 0, kind: input, shape index: {}]   ;;  %s1344_s1 = inlined_call_operand.hbm [shape: f32[1,32], index: 1, kind: input, shape index: {}]   ;;  %s1345_s2 = inlined_call_operand.hbm [shape: bf16[32,96], index: 2, kind: input, shape index: {}]   ;;  %s1346_s3 = inlined_call_operand.hbm [shape: bf16[2,4,8,8], index: 3, kind: output, shape index: {0}]   ;;  %s1347_s4 = inlined_call_operand.hbm [shape: bf16[2,4,8,8], index: 4, kind: output, shape index: {1}]   ;;  %s1348_s5 = inlined_call_operand.hbm [shape: bf16[2,4,8,8], index: 5, kind: output, shape index: {2}]  }
   0x1   :  { %1354 = sst [smem:[#allocation16_spill]] %s1343_s0 }
   0x2   :  { %1355 = sst [smem:[#allocation17_spill]] %s1344_s1 }
   0x3   :  { %1356 = sst [smem:[#allocation18_spill]] %s1345_s2 }
   0x4   :  { %11 = vsyncpa [#allocation3], 0 }
   0x5   :  { %13 = vsyncpa [#allocation3 + $0x1], 0 }
   0x6   :  { %14 = vsyncpa [#allocation6], 0 }
   0x7   :  { %15 = vsyncpa [#allocation4], 0 }
   0x8   :  { %17 = vsyncpa [#allocation4 + $0x1], 0 }
   0x9   :  { %18 = vsyncpa [#allocation10], 0 }
   0xa   :  { %20 = vsyncpa [#allocation10 + $0x1], 0  ;;  %s1117_s18 = smov 0   ;;  %s1119_s19 = smov 0  }
   0xb   :  { %s1121_s20 = smov 0   ;;  %s1123_s21 = smov 0  }
   0xc   :  { %s1125_s22 = smov 0   ;;  %s1127_s23 = smov 0  }
   0xd LB: > { %s1148_s24 = sadd.s32 4294967295, %s1068_s23   ;;  %s1349_s25 = sadd.s32 4294967294, %s1068_s23   ;;  %s1068_s23 = sphi %s1127_s23, %s26_s23   ;;  %s1064_s22 = sphi %s1125_s22, %s1371_s22   ;;  %s1060_s21 = sphi %s1123_s21, %s1370_s21   ;;  %s1056_s20 = sphi %s1121_s20, %s1369_s20   ;;  %s1052_s19 = sphi %s1119_s19, %s1368_s19   ;;  %s1048_s18 = sphi %s1117_s18, %s1367_s18  }
   0xe   : > { %p60_p0 = scmp.ne.s32.totalorder %s1052_s19, %s1048_s18  ;;  %p61_p1 = scmp.eq.s32.totalorder %s1148_s24, 0 }
   0xf   : > { %p134_p2 = scmp.eq.s32.totalorder %s1349_s25, 1  ;;  %p672_p4 = scmp.ge.s32.totalorder %s1068_s23, 1 }
  0x10   : > { %p1158_p3 = por %p61_p1, %p60_p0  ;;  %p197_p6 = scmp.lt.s32.totalorder %s1068_s23, 3 }
  0x11   : > { %p1163_p5 = por %p134_p2, %p60_p0  ;;  %s1359_s1 = sld [smem:[#allocation17_spill]] }
  0x12   : > { %p1171_p7 = pnand %p672_p4, %p197_p6  ;;  %p675_p8 = scmp.ge.s32.totalorder %s1068_s23, 2 }
  0x13   : > { %s1070_s7 = smov [#allocation5]   ;;  %s1361_s2 = sld [smem:[#allocation18_spill]] }
  0x14   : > { %p735_p9 = pneg %p1171_p7  ;;  %s211_s8 = sshll.u32 %s1070_s7, 4  ;;  %s212_s8 = int_to_ptr.vmem [resolvable:$true] %s211_s8 }
  0x15   : > { %s1071_s12 = smov [#allocation7]   ;;  %s1072_s14 = smov 64  }
  0x16   : > { %p736_p10 = pnand %p735_p9, %p61_p1  ;;  %s222_s13 = sshll.u32 %s1071_s12, 4  ;;  %s223_s13 = int_to_ptr.vmem [resolvable:$true] %s222_s13 }
  0x17   : > { %s209_s30 = sshll.u32 %s1359_s1, 4  ;;  %s1073_s15 = smov 4   ;;  %s210_s30 = int_to_ptr.hbm [resolvable:$true] %s209_s30 }
  0x18   : > { %738 = dma.hbm_to_vmem [thread:$0]  (!%p736_p10), %s210_s30, 16, %s212_s8, [#allocation6]  }
  0x19   : > { %s220_s11 = sshll.u32 %s1361_s2, 4  ;;  %p128_p11 = scmp.eq.s32.totalorder %s1148_s24, 1  ;;  %s221_s11 = int_to_ptr.hbm [resolvable:$true] %s220_s11 }
  0x1a   : > { %741 = dma.hbm_to_vmem [thread:$0]  (!%p736_p10), %s221_s11, 256, %s223_s13, [#allocation6], %s1072_s14, %s1072_s14, %s1073_s15  }
  0x1b   : > { %s38_s16 = sadd.s32 1, %s1064_s22  ;;  %s47_s17 = sadd.s32 1, %s1056_s20 }
  0x1c   : > { %p40_p12 = scmp.ge.s32.totalorder %s38_s16, 2  ;;  %p54_p13 = scmp.ne.s32.totalorder %s1056_s20, %s1052_s19 }
  0x1d   : > { %p55_p0 = scmp.eq.s32.totalorder %s1068_s23, 0  ;;  %p758_p4 = scmp.lt.s32.totalorder %s1068_s23, 2 }
  0x1e   : > { %s1373_s16 = smov (%p40_p12, %s38_s16), 0  ;;  %p1191_p2 = por %p128_p11, %p54_p13 }
  0x1f   : > { %s42_s29 = ssub.s32 %s1064_s22, %s1373_s16  ;;  %s236_s30 = sand.u32 1, %s1056_s20  }
  0x20   : > { %p45_p6 = scmp.eq.s32.totalorder %s42_s29, 0  ;;  %p56_p9 = por %p55_p0, %p54_p13 }
  0x21   : > { %s676_s7 = sshll.u32 %s236_s30, 3  ;;  %s677_s8 = sshll.u32 %s1064_s22, 3 }
  0x22   : > { %s1201_s9 = scalar_select %p45_p6, %s1056_s20, %s47_s17  }
  0x23   : > { %s1363_s0 = sld [smem:[#allocation16_spill]]  ;;  %s240_s14 = scalar_lea.vmem [#allocation2], %s676_s7 }
  0x24   : > { %s249_s15 = sshll.u32 %s240_s14, 4  ;;  %p743_p10 = pnand %p758_p4, %p56_p9  ;;  %s250_s15 = int_to_ptr.vmem [resolvable:$true] %s249_s15 }
  0x25   : > { %s237_s25 = scalar_lea.sflag [#allocation3], %s236_s30  ;;  %s1211_s17 = sand.u32 (!%p1171_p7), 1, %s1052_s19  }
  0x26   : > { %s679_s29 = sshll.u32 (!%p1171_p7), %s1211_s17, 3 }
  0x27   : > { %258 = sbr.rel (%p1171_p7) target bundleno = 479 (0x1df), region = 32  ;;  %s264_s10 = scalar_lea.vmem (!%p1171_p7), [#allocation2], %s679_s29 }
  0x29   : > { %s245_s12 = scalar_lea.hbm %s1363_s0, %s677_s8  ;;  %s261_s8 = scalar_lea.sflag (!%p1171_p7), [#allocation3], %s1211_s17 }
  0x2a   : > { %s247_s13 = sshll.u32 %s245_s12, 4  ;;  %s248_s13 = int_to_ptr.hbm [resolvable:$true] %s247_s13 }
  0x2b   : > { %745 = dma.hbm_to_vmem [thread:$0]  (!%p743_p10), %s248_s13, 128, %s250_s15, %s237_s25  }
  0x2c   : > { %1031 = dma.done.wait (%p1158_p3), %s261_s8, 128  }
  0x2d   : > { %1033 = vsyncadd (%p1158_p3), %s261_s8, 4294967168 }
  0x2e   : > { %1035 = dma.done.wait (%p61_p1), [#allocation6], 272  }
  0x2f   : > { %1037 = vsyncadd (%p61_p1), [#allocation6], 4294967024  ;;  %v313_v0 = vld [vmem:[%s264_s10] sm:$0xff]  ;;  %vm316_vm0 = vcmask 261120   ;;  %v1074_v3 = vmov 32.0   ;;  %v714_v9 = vld [vmem:[#allocation7] sm:$0xff] }
  0x30   : > { %v315_v1 = vmul.f32 %v313_v0, %v313_v0  ;;  %828 = vrcp.f32 %v1074_v3  ;;  %v715_v7 = vld [vmem:[#allocation7 + $0x8] sm:$0xff]  ;;  %v827_v21 = vld [vmem:[#allocation5] ss:$0 sm:$0xff]  ;;  %s1226_s25 = sshll.u32 %s1211_s17, 4  ;;  %vm379_vm5 = vcmask 60416   ;;  %s1075_s26 = smov 72  }
  0x31   : > { %370 = vmatpush.bf16.msra.mxu0 %v715_v7  ;;  %s1076_s6 = smov 88   ;;  %s1077_s30 = smov 96  }
  0x32   : > { %v317_v2 = vsel %vm316_vm0, %v315_v1, 0.0  ;;  %s1229_s7 = scalar_lea.vmem [#allocation8], %s1226_s25  ;;  %s1350_s11 = smov 64  }
  0x33   : > { %318 = vadd.xlane.f32.xlu0 %v317_v2  ;;  %s1079_s12 = smov 80   ;;  %s1080_s13 = smov 104  }
  0x34   : > { %s1081_s14 = smov 56   ;;  %s1082_s15 = smov 120  }
  0x35   : > { %371 = vmatpush.bf16.msra.mxu0 %v714_v9  ;;  %s1083_s29 = smov 48   ;;  %s1084_s8 = smov 112  }
  0x36   : > { %v829_v4 = vpop.eup %828  ;;  %s1085_s10 = smov 40  }
  0x37   : > { %v321_v5 = vmul.f32 32.0, %v829_v4  ;;  %vm325_vm1 = vweird.f32 %v829_v4 }
  0x39   : > { %v322_v6 = vsub.f32 1.0, %v321_v5 }
  0x3b   : > { %v323_v8 = vmul.f32 %v829_v4, %v322_v6 }
  0x3d   : > { %v324_v10 = vadd.f32 %v829_v4, %v323_v8 }
  0x3f   : > { %v326_v11 = vsel %vm325_vm1, %v829_v4, %v324_v10 }
  0xa6   : > { %v319_v12 = vpop.xlane.xlu0 %318 }
  0xa7   : > { %v327_v13 = vmul.f32 %v326_v11, %v319_v12 }
  0xa9   : > { %v328_v14 = vadd.f32 1e-06, %v327_v13 }
  0xab   : > { %830 = vrsqrt.f32 %v328_v14  ;;  %vm335_vm3 = vweird.f32 %v328_v14 }
  0xb1   : > { %v831_v15 = vpop.eup %830 }
  0xb2   : > { %v330_v16 = vmul.f32 %v831_v15, %v328_v14  ;;  %vm336_vm2 = vweird.f32 %v831_v15 }
  0xb3   : > { %vm337_vm4 = vmor %vm335_vm3, %vm336_vm2 }
  0xb4   : > { %v331_v17 = vmul.f32 %v831_v15, %v330_v16 }
  0xb6   : > { %v332_v18 = vmul.f32 0.5, %v331_v17 }
  0xb8   : > { %v333_v19 = vsub.f32 1.5, %v332_v18 }
  0xba   : > { %v334_v20 = vmul.f32 %v831_v15, %v333_v19 }
  0xbc   : > { %v338_v22 = vsel %vm337_vm4, %v831_v15, %v334_v20 }
  0xbd   : > { %v339_v23 = vmul.f32 %v338_v22, %v313_v0 }
  0xbf   : > { %v343_v24 = vmul.f32 %v827_v21, %v339_v23 }
  0xc1   : > { %v344_v25 = vpack.c.bf16 %v343_v24, %v343_v24 }
  0xc3   : > { %693 = vmatmul.msk.bf16.vlgmr.msra.gmra.mxu0 %vm316_vm0, %v344_v25 }
 0x140   : > { %v373_v26 = vpop.f32.mrf.mxu0 }
 0x141   : > { %v377_v27 = vmul.f32 0.35355338, %v373_v26  ;;  %v381_v28 = vpack.c.bf16 %v373_v26, %v373_v26 }
 0x143   : > { %v378_v29 = vpack.c.bf16 %v377_v27, %v377_v27  ;;  %427 = vrot.lane.b32.xlu2 %v381_v28, %s1075_s26  ;;  %397 = vrot.lane.b32.xlu1 %v381_v28, %s1076_s6  ;;  %s304_s26 = scalar_lea.vmem [#allocation9], %s1226_s25  ;;  %s1237_s6 = scalar_lea.vmem [#allocation11], %s1226_s25 }
 0x144   : > { %383 = vrot.lane.b32.xlu0 %v381_v28, %s1077_s30  ;;  %s1244_s30 = sshll.u32 %s1060_s21, 4 }
 0x145   : > { %380 = vst.msk [vmem:[%s1229_s7] sm:$0xf] %vm379_vm5, %v378_v29 }
 0x148   : > { %v375_v30 = vpop.f32.mrf.mxu0 }
 0x14b   : > { %387 = vrot.lane.b32.xlu2 %v381_v28, %s1350_s11  ;;  %412 = vrot.lane.b32.xlu1 %v381_v28, %s1079_s12  ;;  %s942_s12 = scalar_lea.hbm %s1347_s4, 32 }
 0x14c   : > { %422 = vrot.lane.b32.xlu0 %v378_v29, %s1080_s13  ;;  %s478_s13 = scalar_lea.hbm %s1347_s4, %s1244_s30 }
 0x14d   : > { %s481_s21 = sshll.u32 %s478_s13, 4  ;;  %s482_s21 = int_to_ptr.hbm [resolvable:$true] %s481_s21 }
 0x153   : > { %402 = vrot.lane.b32.xlu2 %v381_v28, %s1081_s14  ;;  %392 = vrot.lane.b32.xlu1 %v378_v29, %s1082_s15  ;;  %s479_s14 = sshll.u32 %s304_s26, 4  ;;  %s442_s15 = sand.u32 1, %s1148_s24   ;;  %s480_s14 = int_to_ptr.vmem [resolvable:$true] %s479_s14 }
 0x15b   : > { %417 = vrot.lane.b32.xlu2 %v381_v28, %s1083_s29  ;;  %407 = vrot.lane.b32.xlu1 %v378_v29, %s1084_s8  ;;  %s1258_s29 = scalar_lea.sflag [#allocation10], %s442_s15  ;;  %s936_s8 = sshra.s32 %s482_s21, 4  ;;  %s937_s8 = int_to_ptr.hbm [resolvable:$true] %s936_s8 }
 0x15c   : > { %p943_p11 = scmp.lt.s32.totalorder %s937_s8, %s1347_s4 }
 0x163   : > { %432 = vrot.lane.b32.xlu1 %v381_v28, %s1085_s10  ;;  %s938_s10 = scalar_lea.hbm %s937_s8, 16 }
 0x164   : > { %p939_p1 = scmp.ne.s32.totalorder %s937_s8, %s938_s10  ;;  %p944_p12 = scmp.lt.s32.totalorder %s942_s12, %s938_s10 }
 0x166   : > { %p940_p3 = pnand %p939_p1, %p1191_p2  ;;  %p945_p13 = por %p944_p12, %p943_p11 }
 0x168   : > { %p941_p7 = pneg %p940_p3 }
 0x16a   : > { %p946_p0 = pnand %p945_p13, %p941_p7 }
 0x19d   : > { %v428_v31 = vpop.permute.xlu2 %427 }
 0x19e   : > { %701 = vst.msk [vmem:[%s304_s26 + $0xc] sm:$0xf] %vm379_vm5, %v428_v31 }
 0x1a5   : > { %v388_v32 = vpop.permute.xlu2 %387 }
 0x1a6   : > { %390 = vst.msk [vmem:[%s1237_s6] sm:$0xf] %vm379_vm5, %v388_v32 }
 0x1ad   : > { %v403_v33 = vpop.permute.xlu2 %402 }
 0x1ae   : > { %696 = vst.msk [vmem:[%s1237_s6 + $0x4] sm:$0xf] %vm379_vm5, %v403_v33 }
 0x1b5   : > { %v418_v34 = vpop.permute.xlu2 %417  ;;  %v398_v35 = vpop.permute.xlu1 %397 }
 0x1b6   : > { %699 = vst.msk [vmem:[%s1237_s6 + $0x8] sm:$0xf] %vm379_vm5, %v418_v34  ;;  %v384_v36 = vpop.permute.xlu0 %383 }
 0x1b7   : > { %695 = vst.msk [vmem:[%s304_s26 + $0x4] sm:$0xf] %vm379_vm5, %v398_v35 }
 0x1b8   : > { %386 = vst.msk [vmem:[%s304_s26] sm:$0xf] %vm379_vm5, %v384_v36 }
 0x1bd   : > { %v413_v37 = vpop.permute.xlu1 %412 }
 0x1be   : > { %698 = vst.msk [vmem:[%s304_s26 + $0x8] sm:$0xf] %vm379_vm5, %v413_v37  ;;  %v423_v38 = vpop.permute.xlu0 %422 }
 0x1bf   : > { %700 = vst.msk [vmem:[%s1229_s7 + $0xc] sm:$0xf] %vm379_vm5, %v423_v38 }
 0x1c0   : > { %949 = shalt.err (!%p946_p0)
}
 0x1c1   : > { %s1352_s26 = smov 4   ;;  %s1364_s15 = smov 64  }
 0x1c2   : > { %730 = dma.vmem_to_hbm [thread:$0]  (%p1191_p2), %s480_s14, 256, %s482_s21, %s1258_s29, %s1364_s15, %s1364_s15, %s1352_s26  }
 0x1c3   : > { %s460_s10 = scalar_lea.hbm %s1346_s3, %s1244_s30  ;;  %s461_s25 = sshll.u32 %s1229_s7, 4  ;;  %s462_s25 = int_to_ptr.vmem [resolvable:$true] %s461_s25 }
 0x1c4   : > { %s463_s24 = sshll.u32 %s460_s10, 4  ;;  %s496_s0 = scalar_lea.hbm %s1348_s5, %s1244_s30  ;;  %s464_s24 = int_to_ptr.hbm [resolvable:$true] %s463_s24 }
 0x1c5   : > { %v393_v39 = vpop.permute.xlu1 %392  ;;  %s438_s14 = scalar_lea.sflag [#allocation4], %s1211_s17  ;;  %s964_s21 = sshra.s32 %s464_s24, 4  ;;  %s965_s21 = int_to_ptr.hbm [resolvable:$true] %s964_s21 }
 0x1c6   : > { %694 = vst.msk [vmem:[%s1229_s7 + $0x4] sm:$0xf] %vm379_vm5, %v393_v39  ;;  %s966_s26 = scalar_lea.hbm %s965_s21, 16  ;;  %s970_s10 = scalar_lea.hbm %s1346_s3, 32 }
 0x1c7   : > { %p967_p4 = scmp.ne.s32.totalorder %s965_s21, %s966_s26  ;;  %p971_p10 = scmp.lt.s32.totalorder %s965_s21, %s1346_s3 }
 0x1c8   : > { %p972_p1 = scmp.lt.s32.totalorder %s970_s10, %s966_s26 }
 0x1c9   : > { %p968_p6 = pnand %p967_p4, %p1191_p2 }
 0x1ca   : > { %p973_p3 = por %p972_p1, %p971_p10 }
 0x1cb   : > { %p969_p9 = pneg %p968_p6 }
 0x1cd   : > { %v408_v40 = vpop.permute.xlu1 %407  ;;  %p974_p7 = pnand %p973_p3, %p969_p9 }
 0x1ce   : > { %697 = vst.msk [vmem:[%s1229_s7 + $0x8] sm:$0xf] %vm379_vm5, %v408_v40 }
 0x1cf   : > { %977 = shalt.err (!%p974_p7)
}
 0x1d0   : > { %s1365_s17 = smov 4   ;;  %s497_s7 = sshll.u32 %s1237_s6, 4  ;;  %s498_s7 = int_to_ptr.vmem [resolvable:$true] %s497_s7 }
 0x1d1   : > { %729 = dma.vmem_to_hbm [thread:$0]  (%p1191_p2), %s462_s25, 256, %s464_s24, %s438_s14, %s1364_s15, %s1364_s15, %s1365_s17  }
 0x1d2   : > { %s499_s30 = sshll.u32 %s496_s0, 4  ;;  %s998_s13 = scalar_lea.hbm %s1348_s5, 32  ;;  %s500_s30 = int_to_ptr.hbm [resolvable:$true] %s499_s30 }
 0x1d3   : > { %s992_s1 = sshra.s32 %s500_s30, 4  ;;  %s993_s1 = int_to_ptr.hbm [resolvable:$true] %s992_s1 }
 0x1d4   : > { %s994_s2 = scalar_lea.hbm %s993_s1, 16  ;;  %p999_p0 = scmp.lt.s32.totalorder %s993_s1, %s1348_s5 }
 0x1d5   : > { %v433_v41 = vpop.permute.xlu1 %432  ;;  %p995_p11 = scmp.ne.s32.totalorder %s993_s1, %s994_s2  ;;  %p1000_p4 = scmp.lt.s32.totalorder %s998_s13, %s994_s2 }
 0x1d6   : > { %702 = vst.msk [vmem:[%s1237_s6 + $0xc] sm:$0xf] %vm379_vm5, %v433_v41 }
 0x1d7   : > { %p996_p12 = pnand %p995_p11, %p1191_p2  ;;  %p1001_p6 = por %p1000_p4, %p999_p0 }
 0x1d9   : > { %p997_p13 = pneg %p996_p12 }
 0x1db   : > { %p1002_p9 = pnand %p1001_p6, %p997_p13 }
 0x1dd   : > { %1005 = shalt.err (!%p1002_p9)
}
 0x1de   : > { %731 = dma.vmem_to_hbm [thread:$0]  (%p1191_p2), %s498_s7, 256, %s500_s30, %s1258_s29, %s1364_s15, %s1364_s15, %s1365_s17  }
 0x1df PF: > { %s514_s0 = sand.u32 1, %s1048_s18   ;;  %p747_p10 = pnand %p675_p8, %p1163_p5 }
 0x1e0   : > { %s515_s6 = scalar_lea.sflag [#allocation4], %s514_s0 }
 0x1e1   : > { %p748_p1 = pneg %p747_p10 }
 0x1e3   : > { %1039 = dma.done.wait (%p748_p1), %s515_s6, 256  }
 0x1e4   : > { %1041 = vsyncadd (%p748_p1), %s515_s6, 4294967040  ;;  %s1366_s24 = sadd.s32 4294967294, %s1068_s23  }
 0x1e5   : > { %s524_s28 = sand.u32 1, %s1366_s24  }
 0x1e6   : > { %s525_s14 = scalar_lea.sflag [#allocation10], %s524_s28 }
 0x1e7   : > { %1043 = dma.done.wait (%p748_p1), %s525_s14, 512  }
 0x1e8   : > { %1045 = vsyncadd (%p748_p1), %s525_s14, 4294966784  ;;  %s26_s23 = sadd.s32 1, %s1068_s23   ;;  %s1367_s18 = smov %s1052_s19 }
 0x1e9   : > { %p23_p2 = scmp.ge.s32.totalorder %s26_s23, 4   ;;  %s1368_s19 = smov %s1056_s20 }
 0x1ea   : > { %s1369_s20 = smov %s1201_s9  ;;  %s1370_s21 = smov %s1064_s22 }
 0x1eb   : > { %s1371_s22 = smov %s1373_s16  ;;  %25 = sbr.rel (!%p23_p2) target bundleno = 13 (0xd), region = 126 }
 0x1f0   :  { %541 = vsyncpa [#allocation3], 1 }
 0x1f1   :  { %543 = vsyncpa [#allocation3 + $0x1], 1 }
 0x1f2   :  { %544 = vsyncpa [#allocation6], 1 }
 0x1f3   :  { %545 = vsyncpa [#allocation4], 1 }
 0x1f4   :  { %547 = vsyncpa [#allocation4 + $0x1], 1 }
 0x1f5   :  { %548 = vsyncpa [#allocation10], 1 }
 0x1f6   :  { %550 = vsyncpa [#allocation10 + $0x1], 1 }

</bundles_post_ra>
